<compile_context>
chip_gen: v5e
topology: v5e:2x2
jax: 0.10.0
libtpu: 0.0.40
codegen_flags: <defaults>
</compile_context>

<pallas_src>
import jax
import jax.numpy as jnp
from jax import lax
from jax.experimental import pallas as pl
from jax.experimental.pallas import tpu as pltpu


def _img2seq_kernel(xp_ref, wc_ref, bc_ref, wl_ref, bl_ref, o_ref):
    """One batch-tile: fused patch-conv + linear.

    xp_ref: (tb, K, Np)   patchified images, K = C*p*p
    wc_ref: (S, K)        flattened conv weight
    bc_ref: (S, 1)        conv bias
    wl_ref: (Np, E)       linear weight, pre-transposed to (in, out)
    bl_ref: (1, E)        linear bias
    o_ref : (tb, S, E)    output token sequence
    """
    wc = wc_ref[...]
    bc = bc_ref[...]
    wl = wl_ref[...]
    bl = bl_ref[...]
    tb = xp_ref.shape[0]

    def body(b, carry):
        # Conv-as-matmul: (S, K) @ (K, Np) -> (S, Np); already in torch layout
        # (no in-kernel transpose needed).
        y = jnp.dot(wc, xp_ref[b], preferred_element_type=jnp.float32) + bc
        # Linear: (S, Np) @ (Np, E) -> (S, E).
        out = jnp.dot(y.astype(wl.dtype), wl,
                      preferred_element_type=jnp.float32) + bl
        o_ref[b] = out.astype(o_ref.dtype)
        return carry

    lax.fori_loop(0, tb, body, 0, unroll=True)


def _patchify(x, patch):
    """(B, C, H, W) -> (B, C*p*p, Np), Np = (H//p)*(W//p).

    Row index k = c*p*p + i*p + j matches conv.weight.reshape(S, C*p*p)."""
    B, C, H, W = x.shape
    hp, wp = H // patch, W // patch
    xp = x.reshape(B, C, hp, patch, wp, patch)
    xp = xp.transpose(0, 1, 3, 5, 2, 4)              # (B, C, p, p, hp, wp)
    return xp.reshape(B, C * patch * patch, hp * wp)


def image_to_sequence_forward(x, conv_w, conv_b, lin_w, lin_b, *,
                              patch_size, compute_dtype=None,
                              batch_tile=None, vmem_budget_bytes=4 << 20):
    """x: (B, C, H, W); conv_w: (S, C, p, p); conv_b: (S,);
    lin_w: (E, Np) (PyTorch Linear layout); lin_b: (E,).
    Returns (B, S, E) token sequence."""
    B, C, H, W = x.shape
    S = conv_w.shape[0]
    E, Np_in = lin_w.shape
    assert H % patch_size == 0 and W % patch_size == 0
    Np = (H // patch_size) * (W // patch_size)
    K = C * patch_size * patch_size
    assert Np_in == Np and conv_w.shape[1:] == (C, patch_size, patch_size)

    out_dtype = x.dtype
    cdt = out_dtype if compute_dtype is None else compute_dtype
    itemsize = jnp.dtype(cdt).itemsize

    # Layout plumbing (in a real model, store the weights pre-flattened /
    # pre-transposed at init so this never re-runs per forward).
    xp = _patchify(x, patch_size).astype(cdt)            # (B, K, Np)
    wc = conv_w.reshape(S, K).astype(cdt)                # (S, K)
    wl = lin_w.T.astype(cdt)                             # (Np, E)
    bc = conv_b.reshape(S, 1).astype(jnp.float32)
    bl = lin_b.reshape(1, E).astype(jnp.float32)

    # Batch tile: bounded by a VMEM budget; >= 2 grid steps when B >= 2 so both
    # v7x TensorCores are busy; never larger than the batch itself.
    per_batch_bytes = (K * Np + S * E) * itemsize * 2    # in + out, dbl-buffered
    if batch_tile is None:
        tb = max(1, min(16, vmem_budget_bytes // max(per_batch_bytes, 1)))
        tb = min(tb, B)
        if B >= 2:
            tb = min(tb, pl.cdiv(B, 2))
    else:
        tb = max(1, min(batch_tile, B))
    grid_b = pl.cdiv(B, tb)
    Bp = grid_b * tb
    if Bp != B:
        xp = jnp.pad(xp, ((0, Bp - B), (0, 0), (0, 0)))

    weight_bytes = (S * K + Np * E) * itemsize + (S + E) * 4
    block_bytes = tb * per_batch_bytes
    vmem_limit = int(min(max(2 * (block_bytes + weight_bytes) + (4 << 20),
                             16 << 20), 64 << 20))

    cost = pl.CostEstimate(
        flops=2 * B * S * Np * (K + E),
        transcendentals=0,
        bytes_accessed=int(Bp * K * Np * itemsize
                           + (S * K + Np * E) * itemsize + (S + E) * 4
                           + Bp * S * E * jnp.dtype(out_dtype).itemsize),
    )

    out = pl.pallas_call(
        _img2seq_kernel,
        out_shape=jax.ShapeDtypeStruct((Bp, S, E), out_dtype),
        grid_spec=pltpu.PrefetchScalarGridSpec(
            num_scalar_prefetch=0,
            grid=(grid_b,),
            in_specs=[
                pl.BlockSpec((tb, K, Np), lambda i: (i, 0, 0)),
                pl.BlockSpec((S, K), lambda i: (0, 0)),
                pl.BlockSpec((S, 1), lambda i: (0, 0)),
                pl.BlockSpec((Np, E), lambda i: (0, 0)),
                pl.BlockSpec((1, E), lambda i: (0, 0)),
            ],
            out_specs=pl.BlockSpec((tb, S, E), lambda i: (i, 0, 0)),
        ),
        compiler_params=pltpu.CompilerParams(
            dimension_semantics=("parallel",),
            vmem_limit_bytes=vmem_limit,
        ),
        cost_estimate=cost,
    )(xp, wc, bc, wl, bl)

    return out[:B]


if __name__ == "__main__":
    # Config consistent with the module:
    #   n_heads=4, head_dim=8            -> embedding_dim E = 32
    #   sequence_length (conv out_ch)    -> S = 8
    #   input_shape=(4,16,16), patch=4   -> Np = 16, K = C*p*p = 64
    batch, channels, height, width = 2, 4, 16, 16
    patch_size = 4
    seq_len, n_heads, head_dim = 8, 4, 8
    emb_dim = n_heads * head_dim
    n_patches = (height // patch_size) * (width // patch_size)

    key = jax.random.PRNGKey(0)
    kx, kcw, kcb, klw, klb = jax.random.split(key, 5)

    x = jax.random.normal(kx, (batch, channels, height, width), jnp.float32)

    fan_c = channels * patch_size * patch_size
    bc_bound = 1.0 / fan_c ** 0.5
    conv_w = jax.random.uniform(kcw, (seq_len, channels, patch_size, patch_size),
                                jnp.float32, -bc_bound, bc_bound)
    conv_b = jax.random.uniform(kcb, (seq_len,), jnp.float32, -bc_bound, bc_bound)
    bl_bound = 1.0 / n_patches ** 0.5
    lin_w = jax.random.uniform(klw, (emb_dim, n_patches), jnp.float32,
                               -bl_bound, bl_bound)
    lin_b = jax.random.uniform(klb, (emb_dim,), jnp.float32, -bl_bound, bl_bound)

    out = image_to_sequence_forward(x, conv_w, conv_b, lin_w, lin_b,
                                    patch_size=patch_size)
    out = jax.block_until_ready(out)

    # Independent reference mirroring the PyTorch forward.
    y_ref = lax.conv_general_dilated(
        x, conv_w, window_strides=(patch_size, patch_size), padding="VALID",
        dimension_numbers=("NCHW", "OIHW", "NCHW"),
        precision=lax.Precision.HIGHEST)
    y_ref = y_ref + conv_b[None, :, None, None]
    y_ref = y_ref.reshape(batch, seq_len, n_patches)
    ref = jnp.einsum("bsn,en->bse", y_ref, lin_w,
                     precision=lax.Precision.HIGHEST) + lin_b[None, None, :]

    assert out.shape == (batch, seq_len, emb_dim)
    assert jnp.allclose(out, ref, atol=1e-4, rtol=1e-4), float(
        jnp.max(jnp.abs(out - ref)))

    print("KERNEL_OK")
</pallas_src>

<mosaic_0001>
module attributes {stable_mosaic.version = 11 : i64} {
  func.func @_img2seq_kernel(%arg0: i32, %arg1: memref<1x64x16xf32, #tpu.memory_space<vmem>>, %arg2: memref<8x64xf32, #tpu.memory_space<vmem>>, %arg3: memref<8x1xf32, #tpu.memory_space<vmem>>, %arg4: memref<16x32xf32, #tpu.memory_space<vmem>>, %arg5: memref<1x32xf32, #tpu.memory_space<vmem>>, %arg6: memref<1x8x32xf32, #tpu.memory_space<vmem>>) attributes {dimension_semantics = [#tpu.dimension_semantics<parallel>], iteration_bounds = array<i64: 2>, scalar_prefetch = 0 : i64, scratch_operands = 0 : i64, tpu.core_type = #tpu.core_type<tc>, window_params = [{transform_indices = @transform_0, window_bounds = array<i64: 1, 64, 16>}, {pipeline_mode = #tpu.pipeline_mode<synchronous>, transform_indices = @transform_1, window_bounds = array<i64: 8, 64>}, {pipeline_mode = #tpu.pipeline_mode<synchronous>, transform_indices = @transform_2, window_bounds = array<i64: 8, 1>}, {pipeline_mode = #tpu.pipeline_mode<synchronous>, transform_indices = @transform_3, window_bounds = array<i64: 16, 32>}, {pipeline_mode = #tpu.pipeline_mode<synchronous>, transform_indices = @transform_4, window_bounds = array<i64: 1, 32>}, {transform_indices = @transform_5, window_bounds = array<i64: 1, 8, 32>}]} {
    %c0 = arith.constant 0 : index
    %c0_0 = arith.constant 0 : index
    %0 = vector.load %arg2[%c0, %c0_0] : memref<8x64xf32, #tpu.memory_space<vmem>>, vector<8x64xf32>
    %c0_1 = arith.constant 0 : index
    %c0_2 = arith.constant 0 : index
    %1 = vector.load %arg3[%c0_1, %c0_2] : memref<8x1xf32, #tpu.memory_space<vmem>>, vector<8x1xf32>
    %c0_3 = arith.constant 0 : index
    %c0_4 = arith.constant 0 : index
    %2 = vector.load %arg4[%c0_3, %c0_4] : memref<16x32xf32, #tpu.memory_space<vmem>>, vector<16x32xf32>
    %c0_5 = arith.constant 0 : index
    %c0_6 = arith.constant 0 : index
    %3 = vector.load %arg5[%c0_5, %c0_6] : memref<1x32xf32, #tpu.memory_space<vmem>>, vector<1x32xf32>
    %c0_i32 = arith.constant 0 : i32
    %4 = arith.index_cast %c0_i32 : i32 to index
    %c0_7 = arith.constant 0 : index
    %c0_8 = arith.constant 0 : index
    %5 = vector.load %arg1[%4, %c0_7, %c0_8] : memref<1x64x16xf32, #tpu.memory_space<vmem>>, vector<1x64x16xf32>
    %6 = vector.shape_cast %5 : vector<1x64x16xf32> to vector<64x16xf32>
    %cst = arith.constant dense<0.000000e+00> : vector<8x16xf32>
    %7 = tpu.matmul %0, %6, %cst {dimension_numbers = #tpu.dot_dimension_numbers<[1], [0], [0], [1], [0, 0, 1, 1], [], []>} : vector<8x64xf32>, vector<64x16xf32>, vector<8x16xf32> -> vector<8x16xf32>
    %8 = vector.broadcast %1 : vector<8x1xf32> to vector<8x16xf32>
    %9 = arith.addf %7, %8 : vector<8x16xf32>
    %cst_9 = arith.constant dense<0.000000e+00> : vector<8x32xf32>
    %10 = tpu.matmul %9, %2, %cst_9 {dimension_numbers = #tpu.dot_dimension_numbers<[1], [0], [0], [1], [0, 0, 1, 1], [], []>} : vector<8x16xf32>, vector<16x32xf32>, vector<8x32xf32> -> vector<8x32xf32>
    %11 = vector.broadcast %3 : vector<1x32xf32> to vector<8x32xf32>
    %12 = arith.addf %10, %11 : vector<8x32xf32>
    %13 = arith.index_cast %c0_i32 : i32 to index
    %c0_10 = arith.constant 0 : index
    %c0_11 = arith.constant 0 : index
    %14 = vector.load %arg6[%13, %c0_10, %c0_11] : memref<1x8x32xf32, #tpu.memory_space<vmem>>, vector<1x8x32xf32>
    %15 = vector.shape_cast %14 : vector<1x8x32xf32> to vector<8x32xf32>
    %16 = vector.shape_cast %12 : vector<8x32xf32> to vector<1x8x32xf32>
    tpu.vector_store %arg6[%13, %c0_10, %c0_11], %16 {strides = array<i32>} : memref<1x8x32xf32, #tpu.memory_space<vmem>>, vector<1x8x32xf32>,
    %c1_i32 = arith.constant 1 : i32
    return
  }
  func.func @transform_0(%arg0: i32) -> (i32, i32, i32) {
    %c0_i32 = arith.constant 0 : i32
    %c0_i32_0 = arith.constant 0 : i32
    %c0_i32_1 = arith.constant 0 : i32
    return %arg0, %c0_i32, %c0_i32_0 : i32, i32, i32
  }
  func.func @transform_1(%arg0: i32) -> (i32, i32) {
    %c0_i32 = arith.constant 0 : i32
    %c0_i32_0 = arith.constant 0 : i32
    %c0_i32_1 = arith.constant 0 : i32
    return %c0_i32, %c0_i32_0 : i32, i32
  }
  func.func @transform_2(%arg0: i32) -> (i32, i32) {
    %c0_i32 = arith.constant 0 : i32
    %c0_i32_0 = arith.constant 0 : i32
    %c0_i32_1 = arith.constant 0 : i32
    return %c0_i32, %c0_i32_0 : i32, i32
  }
  func.func @transform_3(%arg0: i32) -> (i32, i32) {
    %c0_i32 = arith.constant 0 : i32
    %c0_i32_0 = arith.constant 0 : i32
    %c0_i32_1 = arith.constant 0 : i32
    return %c0_i32, %c0_i32_0 : i32, i32
  }
  func.func @transform_4(%arg0: i32) -> (i32, i32) {
    %c0_i32 = arith.constant 0 : i32
    %c0_i32_0 = arith.constant 0 : i32
    %c0_i32_1 = arith.constant 0 : i32
    return %c0_i32, %c0_i32_0 : i32, i32
  }
  func.func @transform_5(%arg0: i32) -> (i32, i32, i32) {
    %c0_i32 = arith.constant 0 : i32
    %c0_i32_0 = arith.constant 0 : i32
    %c0_i32_1 = arith.constant 0 : i32
    return %arg0, %c0_i32, %c0_i32_0 : i32, i32, i32
  }
}

</mosaic_0001>

<bundles_post_ra>
// kernel: tpu_custom_call.1
= control target key start
LH: loop header
LB: loop body
LE: loop exit
PB: predicated region body
PF: predicated region fallthrough
CT: control target
= control target key end

     0   :  { %10 = vsyncpa [#allocation3], 0  ;;  %s620_s0 = inlined_call_operand.vmem [shape: f32[2,64,16], index: 0, kind: input, shape index: {}]   ;;  %s621_s1 = inlined_call_operand.vmem [shape: f32[8,64], index: 1, kind: input, shape index: {}]   ;;  %s622_s2 = inlined_call_operand.vmem [shape: f32[8,1], index: 2, kind: input, shape index: {}]   ;;  %s623_s3 = inlined_call_operand.vmem [shape: f32[16,32], index: 3, kind: input, shape index: {}]   ;;  %s624_s4 = inlined_call_operand.vmem [shape: f32[1,32], index: 4, kind: input, shape index: {}]   ;;  %s625_s5 = inlined_call_operand.hbm [shape: f32[2,8,32], index: 5, kind: output, shape index: {}]  }
   0x1   :  { %12 = vsyncpa [#allocation3 + $0x1], 0  ;;  %s520_s18 = smov 0   ;;  %s522_s19 = smov 0  }
   0x2   :  { %s524_s20 = smov 0   ;;  %s526_s21 = smov 0  }
   0x3 LB: > { %s541_s22 = sadd.s32 4294967295, %s487_s21   ;;  %s369_s23 = sadd.s32 4294967294, %s487_s21   ;;  %s487_s21 = sphi %s526_s21, %s631_s21   ;;  %s483_s20 = sphi %s524_s20, %s630_s20   ;;  %s479_s19 = sphi %s522_s19, %s629_s19   ;;  %s475_s18 = sphi %s520_s18, %s628_s18  }
   0x4   : > { %s545_s24 = sadd.s32 1, %s487_s21   ;;  %s135_s25 = sadd.s32 1, %s483_s20 }
   0x5   : > { %s132_s26 = ssub.s32 %s487_s21, %s545_s24  ;;  %p145_p0 = scmp.ne.s32.totalorder %s483_s20, %s479_s19 }
   0x6   : > { %p133_p1 = scmp.eq.s32.totalorder %s132_s26, 0  ;;  %p146_p2 = scmp.eq.s32.totalorder %s541_s22, 1 }
   0x7   : > { %p151_p3 = scmp.ne.s32.totalorder %s479_s19, %s475_s18  ;;  %p152_p4 = scmp.eq.s32.totalorder %s369_s23, 1 }
   0x8   : > { %s556_s27 = scalar_select %p133_p1, %s483_s20, %s135_s25  }
   0x9   : > { %p558_p5 = por %p146_p2, %p145_p0  ;;  %p562_p6 = por %p152_p4, %p151_p3 }
   0xa   : > { %p372_p7 = scmp.ge.s32.totalorder %s487_s21, 1  ;;  %p190_p8 = scmp.lt.s32.totalorder %s487_s21, 3 }
   0xc   : > { %p191_p9 = pnand %p372_p7, %p190_p8 }
   0xd   : > { %p218_p10 = scmp.lt.s32.totalorder (!%p191_p9), %s541_s22, 1  ;;  %s215_s23 = sand.u32 (!%p191_p9), 1, %s479_s19  }
   0xe   : > { %194 = sbr.rel (%p191_p9) target bundleno = 298 (0x12a), region = 40  ;;  %s373_s25 = sshll.u32 (!%p191_p9), %s215_s23, 3 }
   0xf   : > { %s379_s26 = sshll.u32 (!%p191_p9), %s541_s22, 3  ;;  %s445_s17 = scalar_lea.hbm (!%p191_p9), %s625_s5, 16 }
  0x10   : > { %s305_s7 = scalar_lea.hbm (!%p191_p9), %s625_s5, %s379_s26 }
  0x11   : > { %s309_s12 = sshll.u32 (!%p191_p9), %s305_s7, 4  ;;  %s310_s12 = int_to_ptr.hbm [resolvable:$true] %s309_s12 }
  0x13   : > { %v224_v0 = vld [vmem:[%s622_s2] sm:$0xff]  ;;  %v226_v1 = vld [vmem:[%s623_s3 + $0x8] sm:$0xff]  ;;  %v489_v2 = vmov 0   ;;  %s219_s9 = scalar_select %p218_p10, %s541_s22, 1  ;;  %vm241_vm0 = vcmask 523264   ;;  %vm268_vm1 = vcmask 130048  }
  0x14   : > { %423 = vset.pattern.permute.xlu0 %v489_v2  ;;  %286 = vmatpush.msra.mxu1 %v226_v1  ;;  %v223_v11 = vld [vmem:[%s621_s1] sm:$0xff]  ;;  %vm292_vm2 = vcmask 261120   ;;  %s439_s22 = sshra.s32 %s310_s12, 4  ;;  %s440_s22 = int_to_ptr.hbm [resolvable:$true] %s439_s22 }
  0x15   : > { %238 = vperm.xlu0 %423, %v224_v0   ;;  %s382_s10 = sshll.u32 %s219_s9, 6  ;;  %v225_v12 = vld [vmem:[%s623_s3] sm:$0xff]  ;;  %s441_s14 = scalar_lea.hbm %s440_s22, 8 }
  0x16   : > { %s222_s13 = scalar_lea.vmem %s620_s0, %s382_s10  ;;  %287 = vmatpush.msra.mxu1 %v225_v12  ;;  %v424_v16 = vld [vmem:[%s624_s4] ss:$0 sm:$0xff]  ;;  %s217_s10 = scalar_lea.vmem [#allocation2], %s373_s25 }
  0x17   : > { %v235_v3 = vld [vmem:[%s222_s13 + $0x38] sm:$0xff]  ;;  %v234_v4 = vld [vmem:[%s222_s13 + $0x30] sm:$0xff]  ;;  %v233_v5 = vld [vmem:[%s222_s13 + $0x28] sm:$0xff]  ;;  %s307_s11 = sshll.u32 %s217_s10, 4  ;;  %p442_p11 = scmp.ne.s32.totalorder %s440_s22, %s441_s14  ;;  %s308_s11 = int_to_ptr.vmem [resolvable:$true] %s307_s11 }
  0x18   : > { %253 = vmatpush.msra.mxu0 %v235_v3  ;;  %v232_v6 = vld [vmem:[%s222_s13 + $0x20] sm:$0xff]  ;;  %v231_v7 = vld [vmem:[%s222_s13 + $0x18] sm:$0xff]  ;;  %v230_v8 = vld [vmem:[%s222_s13 + $0x10] sm:$0xff]  ;;  %p446_p0 = scmp.lt.s32.totalorder %s440_s22, %s625_s5  ;;  %p447_p1 = scmp.lt.s32.totalorder %s445_s17, %s441_s14 }
  0x19   : > { %v229_v9 = vld [vmem:[%s222_s13 + $0x8] sm:$0xff]  ;;  %v228_v10 = vld [vmem:[%s222_s13] sm:$0xff]  ;;  %s295_s13 = scalar_lea.sflag [#allocation3], %s215_s23  ;;  %p443_p12 = pnand %p442_p11, %p558_p5 }
  0x1a   : > { %254 = vmatpush.msra.mxu0 %v234_v4  ;;  %p448_p2 = por %p447_p1, %p446_p0 }
  0x1b   : > { %p444_p13 = pneg %p443_p12 }
  0x1c   : > { %255 = vmatpush.msra.mxu0 %v233_v5 }
  0x1d   : > { %p449_p3 = pnand %p448_p2, %p444_p13 }
  0x1e   : > { %256 = vmatpush.msra.mxu0 %v232_v6 }
  0x20   : > { %257 = vmatpush.msra.mxu0 %v231_v7 }
  0x22   : > { %258 = vmatpush.msra.mxu0 %v230_v8 }
  0x24   : > { %259 = vmatpush.msra.mxu0 %v229_v9 }
  0x26   : > { %260 = vmatpush.msra.mxu0 %v228_v10 }
  0x27   : > { %376 = vmatmul.msk.f32.vlgmr.msra.gmra.mxu0 %vm241_vm0, %v223_v11 }
  0x87   : > { %v239_v13 = vpop.permute.xlu0 %238 }
  0xa4   : > { %v262_v14 = vpop.f32.mrf.mxu0 }
  0xa5   : > { %v263_v15 = vadd.f32 %v262_v14, %v239_v13 }
  0xa7   : > { %377 = vmatmul.msk.f32.vlgmr.msra.gmra.mxu1 %vm268_vm1, %v263_v15 }
 0x124   : > { %v289_v17 = vpop.f32.mrf.mxu1 }
 0x125   : > { %v290_v18 = vadd.f32 %v424_v16, %v289_v17 }
 0x127   : > { %293 = vst.msk [vmem:[%s217_s10] sm:$0xff] %vm292_vm2, %v290_v18 }
 0x128   : > { %452 = shalt.err (!%p449_p3)
}
 0x129   : > { %383 = dma.vmem_to_hbm [thread:$0]  (%p558_p5), %s308_s11, 128, %s310_s12, %s295_s13  }
 0x12a PF: > { %p389_p4 = scmp.ge.s32.totalorder %s487_s21, 2  ;;  %s321_s23 = sand.u32 1, %s475_s18  }
 0x12b   : > { %s322_s30 = scalar_lea.sflag [#allocation3], %s321_s23 }
 0x12c   : > { %p386_p7 = pnand %p389_p4, %p562_p6 }
 0x12e   : > { %p387_p8 = pneg %p386_p7 }
 0x130   : > { %470 = dma.done.wait (%p387_p8), %s322_s30, 128  }
 0x131   : > { %472 = vsyncadd (%p387_p8), %s322_s30, 4294967168  ;;  %p15_p9 = scmp.ge.s32.totalorder %s545_s24, 4   ;;  %s628_s18 = smov %s479_s19 }
 0x132   : > { %s629_s19 = smov %s483_s20  ;;  %s630_s20 = smov %s556_s27 }
 0x133   : > { %s631_s21 = smov %s545_s24  ;;  %17 = sbr.rel (!%p15_p9) target bundleno = 3 (0x3), region = 75 }
 0x138   :  { %328 = vsyncpa [#allocation3], 1 }
 0x139   :  { %330 = vsyncpa [#allocation3 + $0x1], 1 }

</bundles_post_ra>
